<compile_context>
chip_gen: v7x
topology: tpu7x:2x2x1
jax: 0.10.0
libtpu: 0.0.40
codegen_flags: <defaults>
</compile_context>

<pallas_src>
import functools

import numpy as np
import jax
import jax.numpy as jnp
from jax import lax
from jax.experimental import pallas as pl
from jax.experimental.pallas import tpu as pltpu


def _fmlp_kernel(x_ref, a_hi_ref, a_lo_ref, g_hi_ref, g_lo_ref, beta_ref, o_ref):
    x = x_ref[...]                                          # (TB, S*H) f32

    # Manual bf16_3x (== Precision.HIGH) for d = x @ A:
    #   A = (rfft -> filter -> irfft -> +residual -> mean-center -> *gamma) fold.
    x_hi = x.astype(jnp.bfloat16)
    x_lo = (x - x_hi.astype(jnp.float32)).astype(jnp.bfloat16)
    d = (jnp.dot(x_hi, a_hi_ref[...], preferred_element_type=jnp.float32)
         + jnp.dot(x_hi, a_lo_ref[...], preferred_element_type=jnp.float32)
         + jnp.dot(x_lo, a_hi_ref[...], preferred_element_type=jnp.float32))

    # Manual bf16_3x for v = (d*d) @ G: per-(batch, seq) biased variance over
    # hidden, broadcast back to all H lanes via the block-diagonal averaging
    # matrix (rows pre-scaled by 1/gamma^2 so d can stay gamma-scaled).
    p = d * d
    p_hi = p.astype(jnp.bfloat16)
    p_lo = (p - p_hi.astype(jnp.float32)).astype(jnp.bfloat16)
    v = (jnp.dot(p_hi, g_hi_ref[...], preferred_element_type=jnp.float32)
         + jnp.dot(p_hi, g_lo_ref[...], preferred_element_type=jnp.float32)
         + jnp.dot(p_lo, g_hi_ref[...], preferred_element_type=jnp.float32))

    o_ref[...] = d * lax.rsqrt(v + 1e-12) + beta_ref[...]


def _split_hi_lo(m_f32):
    """f32 -> (bf16 hi, bf16 lo) so that hi + lo ~= m to ~2^-16 relative."""
    m = jnp.asarray(m_f32, jnp.float32)
    hi = m.astype(jnp.bfloat16)
    lo = (m - hi.astype(jnp.float32)).astype(jnp.bfloat16)
    return hi, lo


def build_fmlp_constants(complex_weight, gamma, beta, seq_len, hidden):
    """Host-side (float64) precompute, done once per set of weights.

    Folds ortho rfft -> complex filter -> ortho irfft -> residual -> hidden-mean
    subtraction -> LayerNorm gamma into one (S*H, S*H) operator A (columns are
    flattened as index = s*H + h), and 1/gamma^2 into the hidden-group averaging
    matrix G.  Returns bf16 hi/lo splits (for in-kernel bf16_3x matmuls) plus the
    seq-tiled beta row.
    """
    S, H = int(seq_len), int(hidden)
    F = S // 2 + 1
    SH = S * H

    # Guard the VMEM-residency ceiling of the dense fold (see header note).
    const_bytes = 4 * SH * SH * 2
    if const_bytes > 24 * 1024 * 1024:
        raise ValueError(
            f"dense FMLP fold needs {const_bytes/2**20:.1f} MiB of resident "
            "operator constants; re-tile over a K/N grid axis for S*H this large")

    s_idx = np.arange(S)
    f_idx = np.arange(F)
    ang = 2.0 * np.pi * np.outer(f_idx, s_idx) / S          # (F, S)
    scale = 1.0 / np.sqrt(S)
    Cr = np.cos(ang) * scale                                # rfft real part  (F, S)
    Ci = -np.sin(ang) * scale                               # rfft imag part  (F, S)
    c = np.full((F,), 2.0)
    c[0] = 1.0
    if S % 2 == 0:
        c[-1] = 1.0
    Ar = np.cos(ang).T * c * scale                          # irfft real coef (S, F)
    Ai = -np.sin(ang).T * c * scale                         # irfft imag coef (S, F)

    w = np.asarray(complex_weight, dtype=np.float64)        # (1, F, H, 2)
    wr = w[0, :, :, 0]
    wi = w[0, :, :, 1]

    # Per-hidden-channel seq operator K[t, s, h]:  y[:, h] = K[:, :, h] @ x[:, h]
    K = (np.einsum('tf,fh,fs->tsh', Ar, wr, Cr)
         - np.einsum('tf,fh,fs->tsh', Ar, wi, Ci)
         + np.einsum('tf,fh,fs->tsh', Ai, wi, Cr)
         + np.einsum('tf,fh,fs->tsh', Ai, wr, Ci))

    # Dense flattened operator (rows act from the left: h_flat = x_flat @ A).
    A = np.zeros((SH, SH), dtype=np.float64)
    hh = np.arange(H)
    for s in range(S):
        for t in range(S):
            A[s * H + hh, t * H + hh] = K[t, s, :]
    A += np.eye(SH)                                         # + residual connection

    # Group mean over hidden (columns s*H .. s*H+H-1 form one group).
    G = np.kron(np.eye(S), np.ones((H, H)) / H)             # (SH, SH)
    A2 = A @ (np.eye(SH) - G)                               # fold mean subtraction

    gamma_t = np.tile(np.asarray(gamma, np.float64), S)     # (SH,)
    beta_t = np.tile(np.asarray(beta, np.float64), S).reshape(1, SH)

    # Fold LayerNorm gamma: scale A2's columns by gamma so the kernel produces
    # gamma*d directly, and scale G's rows by 1/gamma^2 so the variance is still
    # computed from the unscaled d.  (Channels with gamma exactly 0 would lose
    # their variance contribution; irrelevant for real LayerNorm weights.)
    safe_g = np.where(np.abs(gamma_t) > 0.0, gamma_t, 1.0)
    A2g = A2 * gamma_t[None, :]
    Gg = G / (safe_g[:, None] ** 2)

    a_hi, a_lo = _split_hi_lo(A2g.astype(np.float32))
    g_hi, g_lo = _split_hi_lo(Gg.astype(np.float32))
    return a_hi, a_lo, g_hi, g_lo, jnp.asarray(beta_t, jnp.float32)


def _choose_batch_block(B, batch_block):
    """Rows per grid step.  Multiple of 8 (sublane) unless the block covers the
    whole batch; aim for >= 2 grid steps so v7x's two TensorCores both get work."""
    B = int(B)
    if B <= 8:
        return B
    half = -(-B // 2)                                       # cdiv(B, 2)
    tb = min(int(batch_block), ((half + 7) // 8) * 8)
    tb = max(8, (tb // 8) * 8)                              # sublane-aligned
    return B if tb >= B else tb


@functools.partial(jax.jit, static_argnames=("batch_block",))
def fmlprec_layer(x, a_hi, a_lo, g_hi, g_lo, beta_t, batch_block=2048):
    """x: (B, S, H) f32.  Constant operands from build_fmlp_constants."""
    B, S, H = x.shape
    SH = S * H
    x2 = x.reshape(B, SH).astype(jnp.float32)               # free reshape, lane-dense

    TB = _choose_batch_block(B, batch_block)
    grid = (pl.cdiv(B, TB),)                                # partial last block is
                                                            # masked by Pallas: no
                                                            # host-side pad / slice.

    # VMEM budget: double-buffered x/out blocks + resident hi/lo operators
    # + in-kernel matmul intermediates (d, d*d, hi/lo temps, v, epilogue).
    blk = TB * SH * 4
    needed = 4 * blk + 8 * blk + 2 * (4 * SH * SH * 2 + SH * 4)
    vmem_limit = int(min(48 << 20, max(32 << 20, (needed * 3) // 2)))

    out = pl.pallas_call(
        _fmlp_kernel,
        out_shape=jax.ShapeDtypeStruct((B, SH), jnp.float32),
        grid=grid,
        in_specs=[
            pl.BlockSpec((TB, SH), lambda i: (i, 0)),       # x rows for this step
            pl.BlockSpec((SH, SH), lambda i: (0, 0)),       # A hi (VMEM-resident)
            pl.BlockSpec((SH, SH), lambda i: (0, 0)),       # A lo
            pl.BlockSpec((SH, SH), lambda i: (0, 0)),       # G hi
            pl.BlockSpec((SH, SH), lambda i: (0, 0)),       # G lo
            pl.BlockSpec((1, SH), lambda i: (0, 0)),        # beta (tiled over seq)
        ],
        out_specs=pl.BlockSpec((TB, SH), lambda i: (i, 0)),
        compiler_params=pltpu.CompilerParams(
            dimension_semantics=("parallel",),              # v7x megacore sharding
            vmem_limit_bytes=vmem_limit),
    )(x2, a_hi, a_lo, g_hi, g_lo, beta_t)

    return out.reshape(B, S, H)


if __name__ == "__main__":
    # args.max_seq_length = 8, args.hidden_size = 32, batch = 2
    B, S, H = 2, 8, 32
    key = jax.random.PRNGKey(0)
    kx, kw, kg, kb = jax.random.split(key, 4)

    x = jax.random.normal(kx, (B, S, H), dtype=jnp.float32)
    # nn.Parameter(torch.randn(1, S//2+1, H, 2) * 0.02) -- deterministic init here
    complex_weight = jax.random.normal(kw, (1, S // 2 + 1, H, 2),
                                       dtype=jnp.float32) * 0.02
    # LayerNorm params (default init is ones/zeros; perturbed slightly here so the
    # gamma/beta folding paths are actually exercised by the reference check).
    gamma = (1.0 + 0.1 * jax.random.normal(kg, (H,), dtype=jnp.float32))
    beta = 0.1 * jax.random.normal(kb, (H,), dtype=jnp.float32)

    # Constants built once (outside the per-call hot path).
    consts = build_fmlp_constants(complex_weight, gamma, beta, S, H)

    out = jax.block_until_ready(fmlprec_layer(x, *consts))

    # float64 numpy reference (pocketfft semantics == torch.fft).
    xn = np.asarray(x, dtype=np.float64)
    w = np.asarray(complex_weight, dtype=np.float64)
    wc = w[..., 0] + 1j * w[..., 1]                          # (1, F, H)
    xf = np.fft.rfft(xn, axis=1, norm="ortho") * wc
    y = np.fft.irfft(xf, n=S, axis=1, norm="ortho")
    h = y + xn                                               # dropout = identity (eval)
    u = h.mean(-1, keepdims=True)
    var = ((h - u) ** 2).mean(-1, keepdims=True)
    ref = (h - u) / np.sqrt(var + 1e-12)
    ref = np.asarray(gamma, np.float64) * ref + np.asarray(beta, np.float64)

    out64 = np.asarray(out, dtype=np.float64)
    err = float(np.max(np.abs(out64 - ref)))
    assert np.allclose(out64, ref, atol=5e-4, rtol=5e-4), err
    print("KERNEL_OK")
</pallas_src>

<mosaic_0001>
module attributes {stable_mosaic.version = 11 : i64} {
  func.func @_fmlp_kernel(%arg0: i32, %arg1: memref<2x256xf32, #tpu.memory_space<vmem>>, %arg2: memref<256x256xbf16, #tpu.memory_space<vmem>>, %arg3: memref<256x256xbf16, #tpu.memory_space<vmem>>, %arg4: memref<256x256xbf16, #tpu.memory_space<vmem>>, %arg5: memref<256x256xbf16, #tpu.memory_space<vmem>>, %arg6: memref<1x256xf32, #tpu.memory_space<vmem>>, %arg7: memref<2x256xf32, #tpu.memory_space<vmem>>) attributes {dimension_semantics = [#tpu.dimension_semantics<parallel>], iteration_bounds = array<i64: 1>, scalar_prefetch = 0 : i64, scratch_operands = 0 : i64, tpu.core_type = #tpu.core_type<tc>, window_params = [{transform_indices = @transform_0, window_bounds = array<i64: 2, 256>}, {pipeline_mode = #tpu.pipeline_mode<synchronous>, transform_indices = @transform_1, window_bounds = array<i64: 256, 256>}, {pipeline_mode = #tpu.pipeline_mode<synchronous>, transform_indices = @transform_2, window_bounds = array<i64: 256, 256>}, {pipeline_mode = #tpu.pipeline_mode<synchronous>, transform_indices = @transform_3, window_bounds = array<i64: 256, 256>}, {pipeline_mode = #tpu.pipeline_mode<synchronous>, transform_indices = @transform_4, window_bounds = array<i64: 256, 256>}, {pipeline_mode = #tpu.pipeline_mode<synchronous>, transform_indices = @transform_5, window_bounds = array<i64: 1, 256>}, {transform_indices = @transform_6, window_bounds = array<i64: 2, 256>}]} {
    %c0 = arith.constant 0 : index
    %c0_0 = arith.constant 0 : index
    %0 = vector.load %arg1[%c0, %c0_0] : memref<2x256xf32, #tpu.memory_space<vmem>>, vector<2x256xf32>
    %1 = arith.truncf %0 : vector<2x256xf32> to vector<2x256xbf16>
    %2 = arith.extf %1 : vector<2x256xbf16> to vector<2x256xf32>
    %3 = arith.subf %0, %2 : vector<2x256xf32>
    %4 = arith.truncf %3 : vector<2x256xf32> to vector<2x256xbf16>
    %c0_1 = arith.constant 0 : index
    %c0_2 = arith.constant 0 : index
    %5 = vector.load %arg2[%c0_1, %c0_2] : memref<256x256xbf16, #tpu.memory_space<vmem>>, vector<256x256xbf16>
    %cst = arith.constant dense<0.000000e+00> : vector<2x256xf32>
    %6 = tpu.matmul %1, %5, %cst {dimension_numbers = #tpu.dot_dimension_numbers<[1], [0], [0], [1], [0, 0, 1, 1], [], []>} : vector<2x256xbf16>, vector<256x256xbf16>, vector<2x256xf32> -> vector<2x256xf32>
    %c0_3 = arith.constant 0 : index
    %c0_4 = arith.constant 0 : index
    %7 = vector.load %arg3[%c0_3, %c0_4] : memref<256x256xbf16, #tpu.memory_space<vmem>>, vector<256x256xbf16>
    %cst_5 = arith.constant dense<0.000000e+00> : vector<2x256xf32>
    %8 = tpu.matmul %1, %7, %cst_5 {dimension_numbers = #tpu.dot_dimension_numbers<[1], [0], [0], [1], [0, 0, 1, 1], [], []>} : vector<2x256xbf16>, vector<256x256xbf16>, vector<2x256xf32> -> vector<2x256xf32>
    %9 = arith.addf %6, %8 : vector<2x256xf32>
    %c0_6 = arith.constant 0 : index
    %c0_7 = arith.constant 0 : index
    %10 = vector.load %arg2[%c0_6, %c0_7] : memref<256x256xbf16, #tpu.memory_space<vmem>>, vector<256x256xbf16>
    %cst_8 = arith.constant dense<0.000000e+00> : vector<2x256xf32>
    %11 = tpu.matmul %4, %10, %cst_8 {dimension_numbers = #tpu.dot_dimension_numbers<[1], [0], [0], [1], [0, 0, 1, 1], [], []>} : vector<2x256xbf16>, vector<256x256xbf16>, vector<2x256xf32> -> vector<2x256xf32>
    %12 = arith.addf %9, %11 : vector<2x256xf32>
    %13 = arith.mulf %12, %12 : vector<2x256xf32>
    %14 = arith.truncf %13 : vector<2x256xf32> to vector<2x256xbf16>
    %15 = arith.extf %14 : vector<2x256xbf16> to vector<2x256xf32>
    %16 = arith.subf %13, %15 : vector<2x256xf32>
    %17 = arith.truncf %16 : vector<2x256xf32> to vector<2x256xbf16>
    %c0_9 = arith.constant 0 : index
    %c0_10 = arith.constant 0 : index
    %18 = vector.load %arg4[%c0_9, %c0_10] : memref<256x256xbf16, #tpu.memory_space<vmem>>, vector<256x256xbf16>
    %cst_11 = arith.constant dense<0.000000e+00> : vector<2x256xf32>
    %19 = tpu.matmul %14, %18, %cst_11 {dimension_numbers = #tpu.dot_dimension_numbers<[1], [0], [0], [1], [0, 0, 1, 1], [], []>} : vector<2x256xbf16>, vector<256x256xbf16>, vector<2x256xf32> -> vector<2x256xf32>
    %c0_12 = arith.constant 0 : index
    %c0_13 = arith.constant 0 : index
    %20 = vector.load %arg5[%c0_12, %c0_13] : memref<256x256xbf16, #tpu.memory_space<vmem>>, vector<256x256xbf16>
    %cst_14 = arith.constant dense<0.000000e+00> : vector<2x256xf32>
    %21 = tpu.matmul %14, %20, %cst_14 {dimension_numbers = #tpu.dot_dimension_numbers<[1], [0], [0], [1], [0, 0, 1, 1], [], []>} : vector<2x256xbf16>, vector<256x256xbf16>, vector<2x256xf32> -> vector<2x256xf32>
    %22 = arith.addf %19, %21 : vector<2x256xf32>
    %c0_15 = arith.constant 0 : index
    %c0_16 = arith.constant 0 : index
    %23 = vector.load %arg4[%c0_15, %c0_16] : memref<256x256xbf16, #tpu.memory_space<vmem>>, vector<256x256xbf16>
    %cst_17 = arith.constant dense<0.000000e+00> : vector<2x256xf32>
    %24 = tpu.matmul %17, %23, %cst_17 {dimension_numbers = #tpu.dot_dimension_numbers<[1], [0], [0], [1], [0, 0, 1, 1], [], []>} : vector<2x256xbf16>, vector<256x256xbf16>, vector<2x256xf32> -> vector<2x256xf32>
    %25 = arith.addf %22, %24 : vector<2x256xf32>
    %cst_18 = arith.constant 9.99999996E-13 : f32
    %26 = vector.broadcast %cst_18 : f32 to vector<2x256xf32>
    %27 = arith.addf %25, %26 : vector<2x256xf32>
    %28 = math.rsqrt %27 : vector<2x256xf32>
    %29 = arith.mulf %12, %28 : vector<2x256xf32>
    %c0_19 = arith.constant 0 : index
    %c0_20 = arith.constant 0 : index
    %30 = vector.load %arg6[%c0_19, %c0_20] : memref<1x256xf32, #tpu.memory_space<vmem>>, vector<1x256xf32>
    %31 = vector.broadcast %30 : vector<1x256xf32> to vector<2x256xf32>
    %32 = arith.addf %29, %31 : vector<2x256xf32>
    %c0_21 = arith.constant 0 : index
    %c0_22 = arith.constant 0 : index
    %33 = vector.load %arg7[%c0_21, %c0_22] : memref<2x256xf32, #tpu.memory_space<vmem>>, vector<2x256xf32>
    tpu.vector_store %arg7[%c0_21, %c0_22], %32 {strides = array<i32>} : memref<2x256xf32, #tpu.memory_space<vmem>>, vector<2x256xf32>,
    return
  }
  func.func @transform_0(%arg0: i32) -> (i32, i32) {
    %c0_i32 = arith.constant 0 : i32
    %c0_i32_0 = arith.constant 0 : i32
    return %arg0, %c0_i32 : i32, i32
  }
  func.func @transform_1(%arg0: i32) -> (i32, i32) {
    %c0_i32 = arith.constant 0 : i32
    %c0_i32_0 = arith.constant 0 : i32
    %c0_i32_1 = arith.constant 0 : i32
    return %c0_i32, %c0_i32_0 : i32, i32
  }
  func.func @transform_2(%arg0: i32) -> (i32, i32) {
    %c0_i32 = arith.constant 0 : i32
    %c0_i32_0 = arith.constant 0 : i32
    %c0_i32_1 = arith.constant 0 : i32
    return %c0_i32, %c0_i32_0 : i32, i32
  }
  func.func @transform_3(%arg0: i32) -> (i32, i32) {
    %c0_i32 = arith.constant 0 : i32
    %c0_i32_0 = arith.constant 0 : i32
    %c0_i32_1 = arith.constant 0 : i32
    return %c0_i32, %c0_i32_0 : i32, i32
  }
  func.func @transform_4(%arg0: i32) -> (i32, i32) {
    %c0_i32 = arith.constant 0 : i32
    %c0_i32_0 = arith.constant 0 : i32
    %c0_i32_1 = arith.constant 0 : i32
    return %c0_i32, %c0_i32_0 : i32, i32
  }
  func.func @transform_5(%arg0: i32) -> (i32, i32) {
    %c0_i32 = arith.constant 0 : i32
    %c0_i32_0 = arith.constant 0 : i32
    %c0_i32_1 = arith.constant 0 : i32
    return %c0_i32, %c0_i32_0 : i32, i32
  }
  func.func @transform_6(%arg0: i32) -> (i32, i32) {
    %c0_i32 = arith.constant 0 : i32
    %c0_i32_0 = arith.constant 0 : i32
    return %arg0, %c0_i32 : i32, i32
  }
}

</mosaic_0001>

<bundles_post_ra>
// kernel: fmlprec_layer.1
= control target key start
LH: loop header
LB: loop body
LE: loop exit
PB: predicated region body
PF: predicated region fallthrough
CT: control target
= control target key end

     0   :  { %11 = vsyncpa [#allocation3], 0  ;;  %s1897_s0 = inlined_call_operand.vmem [shape: f32[2,256], index: 0, kind: input, shape index: {}]   ;;  %s1898_s1 = inlined_call_operand.hbm [shape: bf16[256,256], index: 1, kind: input, shape index: {}]   ;;  %s1899_s2 = inlined_call_operand.hbm [shape: bf16[256,256], index: 2, kind: input, shape index: {}]   ;;  %s1900_s3 = inlined_call_operand.hbm [shape: bf16[256,256], index: 3, kind: input, shape index: {}]   ;;  %s1901_s4 = inlined_call_operand.hbm [shape: bf16[256,256], index: 4, kind: input, shape index: {}]   ;;  %s1902_s5 = inlined_call_operand.vmem [shape: f32[1,256], index: 5, kind: input, shape index: {}]   ;;  %s1903_s6 = inlined_call_operand.vmem [shape: f32[2,256], index: 6, kind: output, shape index: {}]  }
   0x1   :  { %12 = vsyncpa [#allocation5], 0 }
   0x2   :  { %13 = vsyncpa [#allocation8], 0  ;;  %s1620_s21 = smov [#allocation4]   ;;  %s1621_s23 = smov [#allocation2]  }
   0x3   :  { %s33_s22 = sshll.u32 %s1620_s21, 4  ;;  %s21_s24 = sshll.u32 %s1621_s23, 4  ;;  %s34_s22 = int_to_ptr.vmem [resolvable:$true] %s33_s22  ;;  %s1662_s24 = int_to_ptr.vmem [resolvable:$true] %s21_s24 }
   0x4   :  { %s1526_s27 = scalar_lea.hbm %s1899_s2, 4096 }
   0x5   :  { %p1527_p0 = scmp.ne.s32.totalorder %s1899_s2, %s1526_s27  ;;  %p1530_p1 = scmp.lt.u32.totalorder %s1526_s27, %s1899_s2 }
   0x7   :  { %p1532_p2 = pnand %p1530_p1, %p1527_p0 }
   0x9   :  { %1535 = shalt.err (!%p1532_p2)
}
   0xa   :  { %s1536_s8 = scalar_lea.vmem %s34_s22, 4096  ;;  %p1541_p4 = scmp.lt.s32.totalorder %s34_s22, %s34_s22 }
   0xb   :  { %p1537_p3 = scmp.ne.s32.totalorder %s34_s22, %s1536_s8  ;;  %p1542_p5 = scmp.lt.s32.totalorder %s1536_s8, %s1536_s8 }
   0xd   :  { %p1543_p6 = por %p1542_p5, %p1541_p4 }
   0xf   :  { %p1544_p7 = pnand %p1543_p6, %p1537_p3 }
  0x11   :  { %1547 = shalt.err (!%p1544_p7)
}
  0x12   :  { %s1622_s9 = smov 128   ;;  %s1623_s10 = smov 8  }
  0x13   :  { %39 = dma.hbm_to_vmem [thread:$0]  %s1899_s2, 4096, %s34_s22, [#allocation5], %s1622_s9, %s1622_s9, %s1623_s10  }
  0x14   :  { %s1548_s15 = scalar_lea.hbm %s1898_s1, 4096 }
  0x15   :  { %p1549_p8 = scmp.ne.s32.totalorder %s1898_s1, %s1548_s15  ;;  %p1552_p9 = scmp.lt.u32.totalorder %s1548_s15, %s1898_s1 }
  0x17   :  { %p1554_p10 = pnand %p1552_p9, %p1549_p8 }
  0x19   :  { %1557 = shalt.err (!%p1554_p10)
}
  0x1a   :  { %s1558_s20 = scalar_lea.vmem %s1662_s24, 4096  ;;  %p1563_p12 = scmp.lt.s32.totalorder %s1662_s24, %s1662_s24 }
  0x1b   :  { %p1559_p11 = scmp.ne.s32.totalorder %s1662_s24, %s1558_s20  ;;  %p1564_p13 = scmp.lt.s32.totalorder %s1558_s20, %s1558_s20 }
  0x1d   :  { %p1565_p0 = por %p1564_p13, %p1563_p12 }
  0x1f   :  { %p1566_p1 = pnand %p1565_p0, %p1559_p11 }
  0x21   :  { %1569 = shalt.err (!%p1566_p1)
}
  0x22   :  { %27 = dma.hbm_to_vmem [thread:$0]  %s1898_s1, 4096, %s1662_s24, [#allocation3], %s1622_s9, %s1622_s9, %s1623_s10  }
  0x23   :  { %s1624_s22 = smov [#allocation6]   ;;  %s1625_s25 = smov [#allocation7]  }
  0x24   :  { %s45_s23 = sshll.u32 %s1624_s22, 4  ;;  %s57_s26 = sshll.u32 %s1625_s25, 4  ;;  %s46_s23 = int_to_ptr.vmem [resolvable:$true] %s45_s23  ;;  %s1699_s26 = int_to_ptr.vmem [resolvable:$true] %s57_s26 }
  0x25   :  { %s1570_s29 = scalar_lea.hbm %s1900_s3, 4096 }
  0x26   :  { %p1571_p2 = scmp.ne.s32.totalorder %s1900_s3, %s1570_s29  ;;  %p1574_p3 = scmp.lt.u32.totalorder %s1570_s29, %s1900_s3 }
  0x28   :  { %p1576_p4 = pnand %p1574_p3, %p1571_p2 }
  0x2a   :  { %1579 = shalt.err (!%p1576_p4)
}
  0x2b   :  { %s1580_s1 = scalar_lea.vmem %s46_s23, 4096  ;;  %p1585_p6 = scmp.lt.s32.totalorder %s46_s23, %s46_s23 }
  0x2c   :  { %p1581_p5 = scmp.ne.s32.totalorder %s46_s23, %s1580_s1  ;;  %p1586_p7 = scmp.lt.s32.totalorder %s1580_s1, %s1580_s1 }
  0x2e   :  { %p1587_p8 = por %p1586_p7, %p1585_p6 }
  0x30   :  { %p1588_p9 = pnand %p1587_p8, %p1581_p5 }
  0x32   :  { %1591 = shalt.err (!%p1588_p9)
}
  0x33   :  { %51 = dma.hbm_to_vmem [thread:$0]  %s1900_s3, 4096, %s46_s23, [#allocation5], %s1622_s9, %s1622_s9, %s1623_s10  }
  0x34   :  { %s1592_s15 = scalar_lea.hbm %s1901_s4, 4096 }
  0x35   :  { %p1593_p10 = scmp.ne.s32.totalorder %s1901_s4, %s1592_s15  ;;  %p1596_p11 = scmp.lt.u32.totalorder %s1592_s15, %s1901_s4 }
  0x37   :  { %p1598_p12 = pnand %p1596_p11, %p1593_p10 }
  0x39   :  { %1601 = shalt.err (!%p1598_p12)
}
  0x3a   :  { %s1602_s20 = scalar_lea.vmem %s1699_s26, 4096  ;;  %p1607_p0 = scmp.lt.s32.totalorder %s1699_s26, %s1699_s26 }
  0x3b   :  { %p1603_p13 = scmp.ne.s32.totalorder %s1699_s26, %s1602_s20  ;;  %p1608_p1 = scmp.lt.s32.totalorder %s1602_s20, %s1602_s20 }
  0x3d   :  { %p1609_p2 = por %p1608_p1, %p1607_p0 }
  0x3f   :  { %p1610_p3 = pnand %p1609_p2, %p1603_p13 }
  0x41   :  { %1613 = shalt.err (!%p1610_p3)
}
  0x42   :  { %63 = dma.hbm_to_vmem [thread:$0]  %s1901_s4, 4096, %s1699_s26, [#allocation8], %s1622_s9, %s1622_s9, %s1623_s10  }
  0x43   :  { %1614 = dma.done.wait [#allocation3], 4096  }
  0x44   :  { %1615 = vsyncadd [#allocation3], 4294963200 }
  0x45   :  { %1616 = dma.done.wait [#allocation5], 8192  }
  0x46   :  { %1617 = vsyncadd [#allocation5], 4294959104 }
  0x47   :  { %1618 = dma.done.wait [#allocation8], 4096  }
  0x48   :  { %1619 = vsyncadd [#allocation8], 4294963200  ;;  %v1330_v0 = vld [vmem:[#allocation4 + $0x4] ss:$8 sps:$4 sm:$0xff]   ;;  %v1332_v1 = vld [vmem:[#allocation4] ss:$8 sps:$4 sm:$0xff]   ;;  %v83_v9 = vlaneseq }
  0x49   :  { %343 = vmatprep.subr.bf16.mxu0 %v1330_v0  ;;  %v1333_v2 = vld [vmem:[#allocation4 + $0x14] ss:$8 sps:$4 sm:$0xff]   ;;  %v1335_v3 = vld [vmem:[#allocation4 + $0x10] ss:$8 sps:$4 sm:$0xff]   ;;  %v1336_v4 = vld [vmem:[#allocation4 + $0x24] ss:$8 sps:$4 sm:$0xff]  }
  0x4a   :  { %344 = vmatpush1.bf16.msra.mxu0 %v1332_v1  ;;  %v1338_v5 = vld [vmem:[#allocation4 + $0x20] ss:$8 sps:$4 sm:$0xff]   ;;  %v1339_v6 = vld [vmem:[#allocation4 + $0x34] ss:$8 sps:$4 sm:$0xff]   ;;  %v1626_v7 = vmov 1983009808  }
  0x4b   :  { %345 = vmatprep.subr.bf16.mxu0 %v1333_v2  ;;  %v81_v8 = vunpack.c.l.s4 %v1626_v7  ;;  %v1341_v10 = vld [vmem:[#allocation4 + $0x30] ss:$8 sps:$4 sm:$0xff]   ;;  %v1342_v11 = vld [vmem:[#allocation4 + $0x44] ss:$8 sps:$4 sm:$0xff]   ;;  %v1736_v13 = vshrl.u32 %v83_v9, 7 }
  0x4c   :  { %v1344_v14 = vld [vmem:[#allocation4 + $0x40] ss:$8 sps:$4 sm:$0xff]   ;;  %v1345_v15 = vld [vmem:[#allocation4 + $0x54] ss:$8 sps:$4 sm:$0xff]   ;;  %v1347_v17 = vld [vmem:[#allocation4 + $0x50] ss:$8 sps:$4 sm:$0xff]  }
  0x4d   :  { %v82_v12 = vunpack.c.0.s8 %v81_v8  ;;  %v1348_v18 = vld [vmem:[#allocation4 + $0x64] ss:$8 sps:$4 sm:$0xff]   ;;  %v78_v19 = vld [vmem:[%s1897_s0] sm:$0xf]  ;;  %v1351_v22 = vld [vmem:[#allocation4 + $0x74] ss:$8 sps:$4 sm:$0xff]  }
  0x4e   :  { %346 = vmatpush1.bf16.msra.mxu0 %v1335_v3  ;;  %v1350_v21 = vld [vmem:[#allocation4 + $0x60] ss:$8 sps:$4 sm:$0xff]   ;;  %v1353_v25 = vld [vmem:[#allocation4 + $0x70] ss:$8 sps:$4 sm:$0xff]   ;;  %v1354_v26 = vld [vmem:[#allocation4 + $0x84] ss:$8 sps:$4 sm:$0xff]  }
  0x4f   :  { %347 = vmatprep.subr.bf16.mxu0 %v1336_v4  ;;  %v85_v16 = vsub.s32 %v82_v12, %v1736_v13  ;;  %v1356_v27 = vld [vmem:[#allocation4 + $0x80] ss:$8 sps:$4 sm:$0xff]   ;;  %v1357_v28 = vld [vmem:[#allocation4 + $0x94] ss:$8 sps:$4 sm:$0xff]   ;;  %v1359_v29 = vld [vmem:[#allocation4 + $0x90] ss:$8 sps:$4 sm:$0xff]  }
  0x50   :  { %v1360_v30 = vld [vmem:[#allocation4 + $0xa4] ss:$8 sps:$4 sm:$0xff]   ;;  %v1362_v31 = vld [vmem:[#allocation4 + $0xa0] ss:$8 sps:$4 sm:$0xff]   ;;  %v1363_v32 = vld [vmem:[#allocation4 + $0xb4] ss:$8 sps:$4 sm:$0xff]  }
  0x51   :  { %v86_v20 = vrot.slane %v78_v19, %v85_v16  ;;  %v1365_v33 = vld [vmem:[#allocation4 + $0xb0] ss:$8 sps:$4 sm:$0xff]   ;;  %v1366_v34 = vld [vmem:[#allocation4 + $0xc4] ss:$8 sps:$4 sm:$0xff]   ;;  %v1368_v35 = vld [vmem:[#allocation4 + $0xc0] ss:$8 sps:$4 sm:$0xff]  }
  0x52   :  { %348 = vmatpush1.bf16.msra.mxu0 %v1338_v5  ;;  %v1369_v37 = vld [vmem:[#allocation4 + $0xd4] ss:$8 sps:$4 sm:$0xff]   ;;  %v1371_v40 = vld [vmem:[#allocation4 + $0xd0] ss:$8 sps:$4 sm:$0xff]   ;;  %v1372_v41 = vld [vmem:[#allocation4 + $0xe4] ss:$8 sps:$4 sm:$0xff]  }
  0x53   :  { %349 = vmatprep.subr.bf16.mxu0 %v1339_v6  ;;  %v87_v23 = vcombine.high %v86_v20, %v86_v20  ;;  %v1742_v36 = vpack.c.bf16 %v86_v20, %v86_v20  ;;  %v1374_v43 = vld [vmem:[#allocation4 + $0xe0] ss:$8 sps:$4 sm:$0xff]   ;;  %v1375_v44 = vld [vmem:[#allocation4 + $0xf4] ss:$8 sps:$4 sm:$0xff]   ;;  %v1377_v46 = vld [vmem:[#allocation4 + $0xf0] ss:$8 sps:$4 sm:$0xff]  }
  0x54   :  { %v1745_v48 = vld [vmem:[#allocation2 + $0x4] ss:$8 sps:$4 sm:$0xff]   ;;  %v1749_v50 = vld [vmem:[#allocation2] ss:$8 sps:$4 sm:$0xff]   ;;  %v1752_v51 = vld [vmem:[#allocation2 + $0x14] ss:$8 sps:$4 sm:$0xff]  }
  0x55   :  { %v91_v24 = vpack.c.bf16 %v87_v23, %v87_v23  ;;  %v92_v39 = vunpack.c.l.bf16 %v1742_v36  ;;  %v1426_v52 = vld [vmem:[#allocation7 + $0x4] ss:$8 sps:$4 sm:$0xff]   ;;  %v1428_v53 = vld [vmem:[#allocation7] ss:$8 sps:$4 sm:$0xff]   ;;  %v1429_v54 = vld [vmem:[#allocation7 + $0x14] ss:$8 sps:$4 sm:$0xff]  }
  0x56   :  { %350 = vmatpush1.bf16.msra.mxu0 %v1341_v10  ;;  %v1756_v55 = vld [vmem:[#allocation2 + $0x10] ss:$8 sps:$4 sm:$0xff]   ;;  %v1759_v56 = vld [vmem:[#allocation2 + $0x24] ss:$8 sps:$4 sm:$0xff]   ;;  %862 = vmatprep.subr.bf16.mxu1 %v1426_v52  ;;  %v1762_v59 = vld [vmem:[#allocation2 + $0x20] ss:$8 sps:$4 sm:$0xff]  }
  0x57   :  { %351 = vmatprep.subr.bf16.mxu0 %v1342_v11  ;;  %375 = vmatprep.mubr.bf16.mxu0 %v91_v24  ;;  %v93_v38 = vunpack.c.l.bf16 %v91_v24  ;;  %v1431_v57 = vld [vmem:[#allocation7 + $0x10] ss:$8 sps:$4 sm:$0xff]   ;;  %v1432_v58 = vld [vmem:[#allocation7 + $0x24] ss:$8 sps:$4 sm:$0xff]   ;;  %v1765_v60 = vld [vmem:[#allocation2 + $0x34] ss:$8 sps:$4 sm:$0xff]  }
  0x58   :  { %863 = vmatpush1.bf16.msra.mxu1 %v1428_v53  ;;  %v1434_v61 = vld [vmem:[#allocation7 + $0x20] ss:$8 sps:$4 sm:$0xff]   ;;  %v1435_v62 = vld [vmem:[#allocation7 + $0x34] ss:$8 sps:$4 sm:$0xff]   ;;  %v1768_v63 = vld [vmem:[#allocation2 + $0x30] ss:$8 sps:$4 sm:$0xff]  }
  0x59   :  { %v96_v42 = vcombine.low %v92_v39, %v93_v38  ;;  %864 = vmatprep.subr.bf16.mxu1 %v1429_v54  ;;  %v1771_v0 = vld [vmem:[#allocation2 + $0x44] ss:$8 sps:$4 sm:$0xff]   ;;  %v1437_v1 = vld [vmem:[#allocation7 + $0x30] ss:$8 sps:$4 sm:$0xff]   ;;  %v1774_v3 = vld [vmem:[#allocation2 + $0x40] ss:$8 sps:$4 sm:$0xff]  }
  0x5a   :  { %352 = vmatpush1.bf16.msra.mxu0 %v1344_v14  ;;  %v1438_v2 = vld [vmem:[#allocation7 + $0x44] ss:$8 sps:$4 sm:$0xff]   ;;  %v1777_v4 = vld [vmem:[#allocation2 + $0x54] ss:$8 sps:$4 sm:$0xff]   ;;  %v1440_v5 = vld [vmem:[#allocation7 + $0x40] ss:$8 sps:$4 sm:$0xff]  }
  0x5b   :  { %353 = vmatprep.subr.bf16.mxu0 %v1345_v15  ;;  %v103_v45 = vrot.slane %v96_v42, %v85_v16  ;;  %v1441_v6 = vld [vmem:[#allocation7 + $0x54] ss:$8 sps:$4 sm:$0xff]   ;;  %v1780_v7 = vld [vmem:[#allocation2 + $0x50] ss:$8 sps:$4 sm:$0xff]   ;;  %v1783_v8 = vld [vmem:[#allocation2 + $0x64] ss:$8 sps:$4 sm:$0xff]  }
  0x5c   :  { %865 = vmatpush1.bf16.msra.mxu1 %v1431_v57  ;;  %v1443_v9 = vld [vmem:[#allocation7 + $0x50] ss:$8 sps:$4 sm:$0xff]   ;;  %v1444_v10 = vld [vmem:[#allocation7 + $0x64] ss:$8 sps:$4 sm:$0xff]   ;;  %v1786_v11 = vld [vmem:[#allocation2 + $0x60] ss:$8 sps:$4 sm:$0xff]  }
  0x5d   :  { %v105_v47 = vsub.f32 %v78_v19, %v103_v45  ;;  %866 = vmatprep.subr.bf16.mxu1 %v1432_v58  ;;  %v1789_v12 = vld [vmem:[#allocation2 + $0x74] ss:$8 sps:$4 sm:$0xff]   ;;  %v1446_v14 = vld [vmem:[#allocation7 + $0x60] ss:$8 sps:$4 sm:$0xff]   ;;  %v1450_v19 = vld [vmem:[#allocation7 + $0x84] ss:$8 sps:$4 sm:$0xff]  }
  0x5e   :  { %354 = vmatpush1.bf16.msra.mxu0 %v1347_v17  ;;  %v1447_v15 = vld [vmem:[#allocation7 + $0x74] ss:$8 sps:$4 sm:$0xff]   ;;  %v1795_v17 = vld [vmem:[#allocation2 + $0x84] ss:$8 sps:$4 sm:$0xff]   ;;  %v1798_v20 = vld [vmem:[#allocation2 + $0x80] ss:$8 sps:$4 sm:$0xff]  }
  0x5f   :  { %355 = vmatprep.subr.bf16.mxu0 %v1348_v18  ;;  %v1747_v49 = vrot.slane %v105_v47, %v85_v16  ;;  %v1792_v16 = vld [vmem:[#allocation2 + $0x70] ss:$8 sps:$4 sm:$0xff]   ;;  %v1453_v23 = vld [vmem:[#allocation7 + $0x94] ss:$8 sps:$4 sm:$0xff]   ;;  %v1464_v39 = vld [vmem:[#allocation7 + $0xc0] ss:$8 sps:$4 sm:$0xff]  }
  0x60   :  { %867 = vmatpush1.bf16.msra.mxu1 %v1434_v61  ;;  %v1449_v18 = vld [vmem:[#allocation7 + $0x70] ss:$8 sps:$4 sm:$0xff]   ;;  %v1419_v38 = vld [vmem:[#allocation2 + $0xd4] ss:$8 sps:$4 sm:$0xff]   ;;  %v1422_v42 = vld [vmem:[#allocation2 + $0xe4] ss:$8 sps:$4 sm:$0xff]  }
  0x61   :  { %868 = vmatprep.subr.bf16.mxu1 %v1435_v62  ;;  %v1420_v45 = vld [vmem:[#allocation2 + $0xe0] ss:$8 sps:$4 sm:$0xff]   ;;  %v1423_v52 = vld [vmem:[#allocation2 + $0xf0] ss:$8 sps:$4 sm:$0xff]   ;;  %v114_v53 = vcombine.high %v1747_v49, %v1747_v49 }
  0x62   :  { %356 = vmatpush1.bf16.msra.mxu0 %v1350_v21  ;;  %v1801_v21 = vld [vmem:[#allocation2 + $0x94] ss:$8 sps:$4 sm:$0xff]   ;;  %v1470_v47 = vld [vmem:[#allocation7 + $0xe0] ss:$8 sps:$4 sm:$0xff]  }
  0x63   :  { %357 = vmatprep.subr.bf16.mxu0 %v1351_v22  ;;  %v1452_v22 = vld [vmem:[#allocation7 + $0x80] ss:$8 sps:$4 sm:$0xff]   ;;  %v118_v54 = vpack.c.bf16 %v114_v53, %v114_v53 }
  0x64   :  { %869 = vmatpush1.bf16.msra.mxu1 %v1437_v1  ;;  %v1858_v61 = vld [vmem:[#allocation6] ss:$8 sps:$4 sm:$0xff]  }
  0x65   :  { %870 = vmatprep.subr.bf16.mxu1 %v1438_v2  ;;  %v1870_v2 = vld [vmem:[#allocation6 + $0x10] ss:$8 sps:$4 sm:$0xff]  }
  0x66   :  { %358 = vmatpush1.bf16.msra.mxu0 %v1353_v25  ;;  %v1807_v25 = vld [vmem:[#allocation2 + $0xa4] ss:$8 sps:$4 sm:$0xff]  }
  0x67   :  { %359 = vmatprep.subr.bf16.mxu0 %v1354_v26  ;;  %v1455_v26 = vld [vmem:[#allocation7 + $0x90] ss:$8 sps:$4 sm:$0xff]  }
  0x68   :  { %871 = vmatpush1.bf16.msra.mxu1 %v1440_v5  ;;  %v1485_v5 = vld [vmem:[#allocation6 + $0x34] ss:$8 sps:$4 sm:$0xff]  }
  0x69   :  { %872 = vmatprep.subr.bf16.mxu1 %v1441_v6  ;;  %v1483_v6 = vld [vmem:[#allocation6 + $0x30] ss:$8 sps:$4 sm:$0xff]  }
  0x6a   :  { %360 = vmatpush1.bf16.msra.mxu0 %v1356_v27  ;;  %v1456_v27 = vld [vmem:[#allocation7 + $0xa4] ss:$8 sps:$4 sm:$0xff]  }
  0x6b   :  { %361 = vmatprep.subr.bf16.mxu0 %v1357_v28  ;;  %v1810_v28 = vld [vmem:[#allocation2 + $0xa0] ss:$8 sps:$4 sm:$0xff]  }
  0x6c   :  { %873 = vmatpush1.bf16.msra.mxu1 %v1443_v9  ;;  %v1491_v9 = vld [vmem:[#allocation6 + $0x54] ss:$8 sps:$4 sm:$0xff]  }
  0x6d   :  { %874 = vmatprep.subr.bf16.mxu1 %v1444_v10  ;;  %v1489_v10 = vld [vmem:[#allocation6 + $0x50] ss:$8 sps:$4 sm:$0xff]  }
  0x6e   :  { %362 = vmatpush1.bf16.msra.mxu0 %v1359_v29  ;;  %v1813_v29 = vld [vmem:[#allocation2 + $0xb4] ss:$8 sps:$4 sm:$0xff]  }
  0x6f   :  { %363 = vmatprep.subr.bf16.mxu0 %v1360_v30  ;;  %v1458_v30 = vld [vmem:[#allocation7 + $0xa0] ss:$8 sps:$4 sm:$0xff]  }
  0x70   :  { %875 = vmatpush1.bf16.msra.mxu1 %v1446_v14  ;;  %v1497_v14 = vld [vmem:[#allocation6 + $0x74] ss:$8 sps:$4 sm:$0xff]  }
  0x71   :  { %876 = vmatprep.subr.bf16.mxu1 %v1447_v15  ;;  %v1495_v15 = vld [vmem:[#allocation6 + $0x70] ss:$8 sps:$4 sm:$0xff]  }
  0x72   :  { %364 = vmatpush1.bf16.msra.mxu0 %v1362_v31  ;;  %v1459_v31 = vld [vmem:[#allocation7 + $0xb4] ss:$8 sps:$4 sm:$0xff]  }
  0x73   :  { %365 = vmatprep.subr.bf16.mxu0 %v1363_v32  ;;  %v1411_v32 = vld [vmem:[#allocation2 + $0xb0] ss:$8 sps:$4 sm:$0xff]  }
  0x74   :  { %877 = vmatpush1.bf16.msra.mxu1 %v1449_v18  ;;  %v1503_v18 = vld [vmem:[#allocation6 + $0x94] ss:$8 sps:$4 sm:$0xff]  }
  0x75   :  { %878 = vmatprep.subr.bf16.mxu1 %v1450_v19  ;;  %v1501_v19 = vld [vmem:[#allocation6 + $0x90] ss:$8 sps:$4 sm:$0xff]  }
  0x76   :  { %366 = vmatpush1.bf16.msra.mxu0 %v1365_v33  ;;  %v1416_v33 = vld [vmem:[#allocation2 + $0xc4] ss:$8 sps:$4 sm:$0xff]  }
  0x77   :  { %367 = vmatprep.subr.bf16.mxu0 %v1366_v34  ;;  %v1461_v34 = vld [vmem:[#allocation7 + $0xb0] ss:$8 sps:$4 sm:$0xff]  }
  0x78   :  { %879 = vmatpush1.bf16.msra.mxu1 %v1452_v22  ;;  %v1509_v22 = vld [vmem:[#allocation6 + $0xb4] ss:$8 sps:$4 sm:$0xff]  }
  0x79   :  { %880 = vmatprep.subr.bf16.mxu1 %v1453_v23  ;;  %v1507_v23 = vld [vmem:[#allocation6 + $0xb0] ss:$8 sps:$4 sm:$0xff]  }
  0x7a   :  { %368 = vmatpush1.bf16.msra.mxu0 %v1368_v35  ;;  %v1462_v35 = vld [vmem:[#allocation7 + $0xc4] ss:$8 sps:$4 sm:$0xff]  }
  0x7b   :  { %369 = vmatprep.subr.bf16.mxu0 %v1369_v37  ;;  %v1414_v37 = vld [vmem:[#allocation2 + $0xc0] ss:$8 sps:$4 sm:$0xff]  }
  0x7c   :  { %881 = vmatpush1.bf16.msra.mxu1 %v1455_v26  ;;  %v1515_v26 = vld [vmem:[#allocation6 + $0xd4] ss:$8 sps:$4 sm:$0xff]  }
  0x7d   :  { %882 = vmatprep.subr.bf16.mxu1 %v1456_v27  ;;  %v1513_v27 = vld [vmem:[#allocation6 + $0xd0] ss:$8 sps:$4 sm:$0xff]  }
  0x7e   :  { %370 = vmatpush1.bf16.msra.mxu0 %v1371_v40  ;;  %v1465_v40 = vld [vmem:[#allocation7 + $0xd4] ss:$8 sps:$4 sm:$0xff]  }
  0x7f   :  { %371 = vmatprep.subr.bf16.mxu0 %v1372_v41  ;;  %v1417_v41 = vld [vmem:[#allocation2 + $0xd0] ss:$8 sps:$4 sm:$0xff]  }
  0x80   :  { %883 = vmatpush1.bf16.msra.mxu1 %v1458_v30  ;;  %v1521_v30 = vld [vmem:[#allocation6 + $0xf4] ss:$8 sps:$4 sm:$0xff]  }
  0x81   :  { %884 = vmatprep.subr.bf16.mxu1 %v1459_v31  ;;  %v1519_v31 = vld [vmem:[#allocation6 + $0xf0] ss:$8 sps:$4 sm:$0xff]  }
  0x82   :  { %372 = vmatpush1.bf16.msra.mxu0 %v1374_v43  ;;  %v1467_v43 = vld [vmem:[#allocation7 + $0xd0] ss:$8 sps:$4 sm:$0xff]  }
  0x83   :  { %373 = vmatprep.subr.bf16.mxu0 %v1375_v44  ;;  %v1468_v44 = vld [vmem:[#allocation7 + $0xe4] ss:$8 sps:$4 sm:$0xff]  }
  0x84   :  { %885 = vmatpush1.bf16.msra.mxu1 %v1461_v34 }
  0x85   :  { %886 = vmatprep.subr.bf16.mxu1 %v1462_v35 }
  0x86   :  { %374 = vmatpush1.bf16.msra.mxu0 %v1377_v46  ;;  %v1425_v46 = vld [vmem:[#allocation2 + $0xf4] ss:$8 sps:$4 sm:$0xff]  }
  0x87   :  { %544 = vmatprep.subr.bf16.mxu0 %v1745_v48 }
  0x88   :  { %887 = vmatpush1.bf16.msra.mxu1 %v1464_v39 }
  0x89   :  { %376 = vmatmul.mubr.bf16.vlgmr.msra.gmra.mrb[0].mxu0 %v1742_v36  ;;  %888 = vmatprep.subr.bf16.mxu1 %v1465_v40 }
  0x8a   :  { %545 = vmatpush1.bf16.msra.mxu0 %v1749_v50  ;;  %576 = vmatprep.mubr.bf16.mxu0 %v91_v24  ;;  %v1804_v24 = vld [vmem:[#allocation2 + $0x90] ss:$8 sps:$4 sm:$0xff]  }
  0x8b   :  { %546 = vmatprep.subr.bf16.mxu0 %v1752_v51 }
  0x8c   :  { %889 = vmatpush1.bf16.msra.mxu1 %v1467_v43 }
  0x8d   :  { %890 = vmatprep.subr.bf16.mxu1 %v1468_v44 }
  0x8e   :  { %547 = vmatpush1.bf16.msra.mxu0 %v1756_v55 }
  0x8f   :  { %548 = vmatprep.subr.bf16.mxu0 %v1759_v56 }
  0x90   :  { %891 = vmatpush1.bf16.msra.mxu1 %v1470_v47 }
  0x92   :  { %549 = vmatpush1.bf16.msra.mxu0 %v1762_v59 }
  0x93   :  { %550 = vmatprep.subr.bf16.mxu0 %v1765_v60 }
  0x96   :  { %551 = vmatpush1.bf16.msra.mxu0 %v1768_v63 }
  0x97   :  { %552 = vmatprep.subr.bf16.mxu0 %v1771_v0 }
  0x9a   :  { %553 = vmatpush1.bf16.msra.mxu0 %v1774_v3 }
  0x9b   :  { %554 = vmatprep.subr.bf16.mxu0 %v1777_v4 }
  0x9e   :  { %555 = vmatpush1.bf16.msra.mxu0 %v1780_v7 }
  0x9f   :  { %556 = vmatprep.subr.bf16.mxu0 %v1783_v8 }
  0xa2   :  { %557 = vmatpush1.bf16.msra.mxu0 %v1786_v11 }
  0xa3   :  { %558 = vmatprep.subr.bf16.mxu0 %v1789_v12 }
  0xa6   :  { %559 = vmatpush1.bf16.msra.mxu0 %v1792_v16 }
  0xa7   :  { %560 = vmatprep.subr.bf16.mxu0 %v1795_v17 }
  0xaa   :  { %561 = vmatpush1.bf16.msra.mxu0 %v1798_v20 }
  0xab   :  { %562 = vmatprep.subr.bf16.mxu0 %v1801_v21 }
  0xae   :  { %563 = vmatpush1.bf16.msra.mxu0 %v1804_v24 }
  0xaf   :  { %564 = vmatprep.subr.bf16.mxu0 %v1807_v25 }
  0xb2   :  { %565 = vmatpush1.bf16.msra.mxu0 %v1810_v28 }
  0xb3   :  { %566 = vmatprep.subr.bf16.mxu0 %v1813_v29 }
  0xb6   :  { %567 = vmatpush1.bf16.msra.mxu0 %v1411_v32 }
  0xb7   :  { %568 = vmatprep.subr.bf16.mxu0 %v1416_v33 }
  0xba   :  { %569 = vmatpush1.bf16.msra.mxu0 %v1414_v37 }
  0xbb   :  { %570 = vmatprep.subr.bf16.mxu0 %v1419_v38 }
  0xbe   :  { %571 = vmatpush1.bf16.msra.mxu0 %v1417_v41 }
  0xbf   :  { %572 = vmatprep.subr.bf16.mxu0 %v1422_v42 }
  0xc2   :  { %573 = vmatpush1.bf16.msra.mxu0 %v1420_v45 }
  0xc3   :  { %574 = vmatprep.subr.bf16.mxu0 %v1425_v46 }
  0xc6   :  { %575 = vmatpush1.bf16.msra.mxu0 %v1423_v52 }
  0xc7   :  { %585 = vmatprep.subr.bf16.mxu0 %v1745_v48  ;;  %v1471_v48 = vld [vmem:[#allocation7 + $0xf4] ss:$8 sps:$4 sm:$0xff]  }
  0xc8   :  { %892 = vmatprep.subr.bf16.mxu1 %v1471_v48 }
  0xc9   :  { %577 = vmatmul.mubr.bf16.vlgmr.msra.gmra.mrb[0].mxu0 %v1742_v36  ;;  %v117_v36 = vpack.c.bf16 %v1747_v49, %v1747_v49 }
  0xca   :  { %586 = vmatpush1.bf16.msra.mxu0 %v1749_v50  ;;  %617 = vmatprep.mubr.bf16.mxu0 %v118_v54  ;;  %v1473_v50 = vld [vmem:[#allocation7 + $0xf0] ss:$8 sps:$4 sm:$0xff]  }
  0xcb   :  { %587 = vmatprep.subr.bf16.mxu0 %v1752_v51  ;;  %893 = vmatpush1.bf16.msra.mxu1 %v1473_v50  ;;  %v1845_v51 = vld [vmem:[#allocation6 + $0x4] ss:$8 sps:$4 sm:$0xff]  }
  0xcc   :  { %1063 = vmatprep.subr.bf16.mxu1 %v1845_v51 }
  0xce   :  { %588 = vmatpush1.bf16.msra.mxu0 %v1756_v55 }
  0xcf   :  { %589 = vmatprep.subr.bf16.mxu0 %v1759_v56 }
  0xd2   :  { %590 = vmatpush1.bf16.msra.mxu0 %v1762_v59 }
  0xd3   :  { %591 = vmatprep.subr.bf16.mxu0 %v1765_v60 }
  0xd6   :  { %592 = vmatpush1.bf16.msra.mxu0 %v1768_v63  ;;  %v1864_v63 = vld [vmem:[#allocation6 + $0x14] ss:$8 sps:$4 sm:$0xff]  }
  0xd7   :  { %593 = vmatprep.subr.bf16.mxu0 %v1771_v0 }
  0xda   :  { %594 = vmatpush1.bf16.msra.mxu0 %v1774_v3  ;;  %v1873_v3 = vld [vmem:[#allocation6 + $0x24] ss:$8 sps:$4 sm:$0xff]  }
  0xdb   :  { %595 = vmatprep.subr.bf16.mxu0 %v1777_v4  ;;  %v1480_v4 = vld [vmem:[#allocation6 + $0x20] ss:$8 sps:$4 sm:$0xff]  }
  0xde   :  { %596 = vmatpush1.bf16.msra.mxu0 %v1780_v7  ;;  %v1488_v7 = vld [vmem:[#allocation6 + $0x44] ss:$8 sps:$4 sm:$0xff]  }
  0xdf   :  { %597 = vmatprep.subr.bf16.mxu0 %v1783_v8  ;;  %v1486_v8 = vld [vmem:[#allocation6 + $0x40] ss:$8 sps:$4 sm:$0xff]  }
  0xe2   :  { %598 = vmatpush1.bf16.msra.mxu0 %v1786_v11  ;;  %v1494_v11 = vld [vmem:[#allocation6 + $0x64] ss:$8 sps:$4 sm:$0xff]  }
  0xe3   :  { %599 = vmatprep.subr.bf16.mxu0 %v1789_v12  ;;  %v1492_v12 = vld [vmem:[#allocation6 + $0x60] ss:$8 sps:$4 sm:$0xff]  }
  0xe6   :  { %600 = vmatpush1.bf16.msra.mxu0 %v1792_v16  ;;  %v1500_v16 = vld [vmem:[#allocation6 + $0x84] ss:$8 sps:$4 sm:$0xff]  }
  0xe7   :  { %601 = vmatprep.subr.bf16.mxu0 %v1795_v17  ;;  %v1498_v17 = vld [vmem:[#allocation6 + $0x80] ss:$8 sps:$4 sm:$0xff]  }
  0xea   :  { %602 = vmatpush1.bf16.msra.mxu0 %v1798_v20  ;;  %v1506_v20 = vld [vmem:[#allocation6 + $0xa4] ss:$8 sps:$4 sm:$0xff]  }
  0xeb   :  { %603 = vmatprep.subr.bf16.mxu0 %v1801_v21  ;;  %v1504_v21 = vld [vmem:[#allocation6 + $0xa0] ss:$8 sps:$4 sm:$0xff]  }
  0xee   :  { %604 = vmatpush1.bf16.msra.mxu0 %v1804_v24  ;;  %v1512_v24 = vld [vmem:[#allocation6 + $0xc4] ss:$8 sps:$4 sm:$0xff]  }
  0xef   :  { %605 = vmatprep.subr.bf16.mxu0 %v1807_v25  ;;  %v1510_v25 = vld [vmem:[#allocation6 + $0xc0] ss:$8 sps:$4 sm:$0xff]  }
  0xf2   :  { %606 = vmatpush1.bf16.msra.mxu0 %v1810_v28  ;;  %v1518_v28 = vld [vmem:[#allocation6 + $0xe4] ss:$8 sps:$4 sm:$0xff]  }
  0xf3   :  { %607 = vmatprep.subr.bf16.mxu0 %v1813_v29  ;;  %v1516_v29 = vld [vmem:[#allocation6 + $0xe0] ss:$8 sps:$4 sm:$0xff]  }
  0xf6   :  { %608 = vmatpush1.bf16.msra.mxu0 %v1411_v32 }
  0xf7   :  { %609 = vmatprep.subr.bf16.mxu0 %v1416_v33 }
  0xfa   :  { %610 = vmatpush1.bf16.msra.mxu0 %v1414_v37 }
  0xfb   :  { %611 = vmatprep.subr.bf16.mxu0 %v1419_v38 }
  0xfe   :  { %612 = vmatpush1.bf16.msra.mxu0 %v1417_v41 }
  0xff   :  { %613 = vmatprep.subr.bf16.mxu0 %v1422_v42 }
 0x102   :  { %614 = vmatpush1.bf16.msra.mxu0 %v1420_v45 }
 0x103   :  { %615 = vmatprep.subr.bf16.mxu0 %v1425_v46 }
 0x106   :  { %616 = vmatpush1.bf16.msra.mxu0 %v1423_v52 }
 0x109   :  { %618 = vmatmul.mubr.bf16.vlgmr.msra.gmra.mrb[0].mxu0 %v117_v36 }
 0x1dc   :  { %v1848_v55 = vpop.f32.mrb[0].mxu0 }
 0x1dd   :  { %v1852_v56 = vmul.f32 %v1848_v55, %v1848_v55  ;;  %v1854_v57 = vpop.f32.mrb[1].mxu0 }
 0x1de   :  { %v629_v49 = vmul.f32 %v1854_v57, %v1854_v57  ;;  %v623_v58 = vpop.f32.mrb[2].mxu0 }
 0x1df   :  { %v624_v59 = vpop.f32.mrb[3].mxu0  ;;  %v1862_v62 = vpack.c.bf16 %v1852_v56, %v1852_v56  ;;  %v1161_v58 = vsub.s32 1, %v1736_v13 }
 0x1e0   :  { %v631_v60 = vpack.c.bf16 %v629_v49, %v629_v49 }
 0x1e1   :  { %v632_v33 = vunpack.c.l.bf16 %v1862_v62 }
 0x1e2   :  { %v633_v0 = vunpack.c.l.bf16 %v631_v60  ;;  %894 = vmatprep.mubr.bf16.mxu1 %v631_v60 }
 0x1e3   :  { %895 = vmatmul.mubr.bf16.vlgmr.msra.gmra.mrb[0].mxu1 %v1862_v62  ;;  %v634_v34 = vsub.f32 %v1852_v56, %v632_v33  ;;  %v1157_v56 = vsub.s32 0, %v1736_v13 }
 0x1e4   :  { %v1867_v1 = vsub.f32 %v629_v49, %v633_v0  ;;  %1064 = vmatpush1.bf16.msra.mxu1 %v1858_v61  ;;  %1095 = vmatprep.mubr.bf16.mxu1 %v631_v60  ;;  %v1153_v49 = vld [vmem:[%s1902_s5] sm:$0x3] }
 0x1e5   :  { %1065 = vmatprep.subr.bf16.mxu1 %v1864_v63  ;;  %v636_v35 = vpack.c.bf16 %v634_v34, %v634_v34  ;;  %v1158_v59 = vrot.slane %v1153_v49, %v1157_v56 }
 0x1e6   :  { %v637_v32 = vpack.c.bf16 %v1867_v1, %v1867_v1 }
 0x1e8   :  { %1066 = vmatpush1.bf16.msra.mxu1 %v1870_v2 }
 0x1e9   :  { %1067 = vmatprep.subr.bf16.mxu1 %v1873_v3 }
 0x1ec   :  { %1068 = vmatpush1.bf16.msra.mxu1 %v1480_v4 }
 0x1ed   :  { %1069 = vmatprep.subr.bf16.mxu1 %v1485_v5 }
 0x1f0   :  { %1070 = vmatpush1.bf16.msra.mxu1 %v1483_v6 }
 0x1f1   :  { %1071 = vmatprep.subr.bf16.mxu1 %v1488_v7 }
 0x1f4   :  { %1072 = vmatpush1.bf16.msra.mxu1 %v1486_v8 }
 0x1f5   :  { %1073 = vmatprep.subr.bf16.mxu1 %v1491_v9 }
 0x1f8   :  { %1074 = vmatpush1.bf16.msra.mxu1 %v1489_v10 }
 0x1f9   :  { %1075 = vmatprep.subr.bf16.mxu1 %v1494_v11 }
 0x1fc   :  { %1076 = vmatpush1.bf16.msra.mxu1 %v1492_v12 }
 0x1fd   :  { %1077 = vmatprep.subr.bf16.mxu1 %v1497_v14 }
 0x200   :  { %1078 = vmatpush1.bf16.msra.mxu1 %v1495_v15 }
 0x201   :  { %1079 = vmatprep.subr.bf16.mxu1 %v1500_v16 }
 0x204   :  { %1080 = vmatpush1.bf16.msra.mxu1 %v1498_v17 }
 0x205   :  { %1081 = vmatprep.subr.bf16.mxu1 %v1503_v18 }
 0x208   :  { %1082 = vmatpush1.bf16.msra.mxu1 %v1501_v19 }
 0x209   :  { %1083 = vmatprep.subr.bf16.mxu1 %v1506_v20 }
 0x20c   :  { %1084 = vmatpush1.bf16.msra.mxu1 %v1504_v21 }
 0x20d   :  { %1085 = vmatprep.subr.bf16.mxu1 %v1509_v22 }
 0x210   :  { %1086 = vmatpush1.bf16.msra.mxu1 %v1507_v23 }
 0x211   :  { %1087 = vmatprep.subr.bf16.mxu1 %v1512_v24 }
 0x214   :  { %1088 = vmatpush1.bf16.msra.mxu1 %v1510_v25 }
 0x215   :  { %1089 = vmatprep.subr.bf16.mxu1 %v1515_v26 }
 0x218   :  { %1090 = vmatpush1.bf16.msra.mxu1 %v1513_v27 }
 0x219   :  { %1091 = vmatprep.subr.bf16.mxu1 %v1518_v28 }
 0x21c   :  { %1092 = vmatpush1.bf16.msra.mxu1 %v1516_v29 }
 0x21d   :  { %1093 = vmatprep.subr.bf16.mxu1 %v1521_v30 }
 0x220   :  { %1094 = vmatpush1.bf16.msra.mxu1 %v1519_v31 }
 0x221   :  { %1104 = vmatprep.subr.bf16.mxu1 %v1845_v51 }
 0x223   :  { %1096 = vmatmul.mubr.bf16.vlgmr.msra.gmra.mrb[4].mxu1 %v1862_v62 }
 0x224   :  { %1105 = vmatpush1.bf16.msra.mxu1 %v1858_v61  ;;  %1136 = vmatprep.mubr.bf16.mxu1 %v637_v32  ;;  %v1162_v61 = vrot.slane %v1153_v49, %v1161_v58 }
 0x225   :  { %1106 = vmatprep.subr.bf16.mxu1 %v1864_v63 }
 0x228   :  { %1107 = vmatpush1.bf16.msra.mxu1 %v1870_v2 }
 0x229   :  { %1108 = vmatprep.subr.bf16.mxu1 %v1873_v3 }
 0x22c   :  { %1109 = vmatpush1.bf16.msra.mxu1 %v1480_v4 }
 0x22d   :  { %1110 = vmatprep.subr.bf16.mxu1 %v1485_v5 }
 0x230   :  { %1111 = vmatpush1.bf16.msra.mxu1 %v1483_v6 }
 0x231   :  { %1112 = vmatprep.subr.bf16.mxu1 %v1488_v7 }
 0x234   :  { %1113 = vmatpush1.bf16.msra.mxu1 %v1486_v8 }
 0x235   :  { %1114 = vmatprep.subr.bf16.mxu1 %v1491_v9 }
 0x238   :  { %1115 = vmatpush1.bf16.msra.mxu1 %v1489_v10 }
 0x239   :  { %1116 = vmatprep.subr.bf16.mxu1 %v1494_v11 }
 0x23c   :  { %1117 = vmatpush1.bf16.msra.mxu1 %v1492_v12 }
 0x23d   :  { %1118 = vmatprep.subr.bf16.mxu1 %v1497_v14 }
 0x240   :  { %1119 = vmatpush1.bf16.msra.mxu1 %v1495_v15 }
 0x241   :  { %1120 = vmatprep.subr.bf16.mxu1 %v1500_v16 }
 0x244   :  { %1121 = vmatpush1.bf16.msra.mxu1 %v1498_v17 }
 0x245   :  { %1122 = vmatprep.subr.bf16.mxu1 %v1503_v18 }
 0x248   :  { %1123 = vmatpush1.bf16.msra.mxu1 %v1501_v19 }
 0x249   :  { %1124 = vmatprep.subr.bf16.mxu1 %v1506_v20 }
 0x24c   :  { %1125 = vmatpush1.bf16.msra.mxu1 %v1504_v21 }
 0x24d   :  { %1126 = vmatprep.subr.bf16.mxu1 %v1509_v22 }
 0x250   :  { %1127 = vmatpush1.bf16.msra.mxu1 %v1507_v23 }
 0x251   :  { %1128 = vmatprep.subr.bf16.mxu1 %v1512_v24 }
 0x254   :  { %1129 = vmatpush1.bf16.msra.mxu1 %v1510_v25 }
 0x255   :  { %1130 = vmatprep.subr.bf16.mxu1 %v1515_v26 }
 0x258   :  { %1131 = vmatpush1.bf16.msra.mxu1 %v1513_v27 }
 0x259   :  { %1132 = vmatprep.subr.bf16.mxu1 %v1518_v28 }
 0x25c   :  { %1133 = vmatpush1.bf16.msra.mxu1 %v1516_v29 }
 0x25d   :  { %1134 = vmatprep.subr.bf16.mxu1 %v1521_v30 }
 0x260   :  { %1135 = vmatpush1.bf16.msra.mxu1 %v1519_v31 }
 0x263   :  { %1137 = vmatmul.mubr.bf16.vlgmr.msra.gmra.mrb[8].mxu1 %v636_v35 }
 0x2b6   :  { %v896_v37 = vpop.f32.mrb[0].mxu1 }
 0x2b7   :  { %v898_v38 = vpop.f32.mrb[1].mxu1 }
 0x2b8   :  { %v900_v39 = vpop.f32.mrb[2].mxu1 }
 0x2b9   :  { %v901_v40 = vpop.f32.mrb[3].mxu1 }
 0x2f6   :  { %v1097_v41 = vpop.f32.mrb[4].mxu1 }
 0x2f7   :  { %v1098_v42 = vadd.f32 %v1097_v41, %v896_v37  ;;  %v1099_v43 = vpop.f32.mrb[5].mxu1 }
 0x2f8   :  { %v1100_v44 = vadd.f32 %v1099_v43, %v898_v38  ;;  %v1101_v45 = vpop.f32.mrb[6].mxu1 }
 0x2f9   :  { %v1102_v46 = vpop.f32.mrb[7].mxu1 }
 0x336   :  { %v1138_v47 = vpop.f32.mrb[8].mxu1 }
 0x337   :  { %v1145_v52 = vadd.f32 %v1138_v47, %v1098_v42  ;;  %v1140_v53 = vpop.f32.mrb[9].mxu1 }
 0x338   :  { %v1146_v54 = vadd.f32 %v1140_v53, %v1100_v44  ;;  %v1142_v36 = vpop.f32.mrb[10].mxu1 }
 0x339   :  { %v1147_v48 = vadd.f32 1e-12, %v1145_v52  ;;  %v1143_v50 = vpop.f32.mrb[11].mxu1 }
 0x33a   :  { %v1148_v51 = vadd.f32 1e-12, %v1146_v54 }
 0x33b   :  { %1522 = vrsqrt.f32 %v1147_v48 }
 0x33c   :  { %1524 = vrsqrt.f32 %v1148_v51 }
 0x345   :  { %v1523_v60 = vpop.eup %1522 }
 0x346   :  { %v1525_v62 = vpop.eup %1524  ;;  %v1151_v63 = vmul.f32 %v1523_v60, %v1848_v55 }
 0x347   :  { %v1152_v0 = vmul.f32 %v1525_v62, %v1854_v57 }
 0x348   :  { %v1165_v1 = vadd.f32 %v1158_v59, %v1151_v63 }
 0x349   :  { %v1166_v2 = vadd.f32 %v1162_v61, %v1152_v0 }
 0x34b   :  { %v1169_v3 = vcombine.low %v1165_v1, %v1166_v2 }
 0x34d   :  { %1314 = vst.sshfl [vmem:[%s1903_s6] sm:$0x33 pattern:$0x76325410] %v1169_v3 }
 0x34e   :  { %1183 = vsyncpa [#allocation3], 1 }
 0x34f   :  { %1184 = vsyncpa [#allocation5], 1 }
 0x350   :  { %1185 = vsyncpa [#allocation8], 1 }

</bundles_post_ra>
